<compile_context>
chip_gen: v6e
topology: v6e:2x2x1
jax: 0.10.0
libtpu: 0.0.40
codegen_flags: <defaults>
</compile_context>

<pallas_src>
import functools

import jax
import jax.numpy as jnp
from jax.experimental import pallas as pl
from jax.experimental.pallas import tpu as pltpu


def _round_up(a, b):
    return ((a + b - 1) // b) * b


# ----------------------------------------------------------------------------
# Pallas kernel: fused  W_g(g) + W_x(x) -> ReLU -> psi conv -> sigmoid -> x*psi
# Batch is folded into the sublane (row) axis; the spatial axis is lane-dense.
# ----------------------------------------------------------------------------
def _attention_block_kernel(g_ref, x_ref, wg_ref, wx_ref, b1_ref, wp_ref,
                            bp_ref, o_ref, *, n_batch, f_g, f_l, f_int, chunk):
    """Shapes seen by the kernel (tS = spatial tile width, lane axis):

    g_ref : (n_batch*f_g, tS)    x_ref : (n_batch*f_l, tS)
    wg_ref: (f_int, f_g)         wx_ref: (f_int, f_l)      (BN folded)
    b1_ref: (f_int, 1)           wp_ref: (f_int, 1)        (BN folded)
    bp_ref: (1, 1)               o_ref : (n_batch*f_l, tS)
    """
    ts = g_ref.shape[-1]
    wg = wg_ref[...]
    wx = wx_ref[...]
    b1 = b1_ref[...]
    wp = wp_ref[...]
    bp = bp_ref[...]

    for n in range(n_batch):                                  # static unroll, small N
        g_n = g_ref[pl.ds(n * f_g, f_g), :].astype(jnp.float32)   # (f_g, tS)
        x_n = x_ref[pl.ds(n * f_l, f_l), :].astype(jnp.float32)   # (f_l, tS)

        # psi pre-activation accumulated over F_int in chunks of `chunk` rows so
        # the (f_int, tS) ReLU intermediate is never live all at once (no spill
        # even at large tS).
        p = jnp.zeros((1, ts), jnp.float32)
        for c in range(0, f_int, chunk):
            e = min(c + chunk, f_int)
            # 1x1 convolutions on the MXU, accumulated in one f32 value.
            h = (jnp.dot(wg[c:e, :], g_n, preferred_element_type=jnp.float32)
                 + jnp.dot(wx[c:e, :], x_n, preferred_element_type=jnp.float32)
                 + b1[c:e, :])
            h = jnp.maximum(h, 0.0)                            # ReLU
            # psi contraction of this chunk: VALU mul + XLU sublane reduction.
            p = p + jnp.sum(h * wp[c:e, :], axis=0, keepdims=True)

        psi = jax.nn.sigmoid(p + bp)                           # (1, tS)
        o_ref[pl.ds(n * f_l, f_l), :] = (x_n * psi).astype(o_ref.dtype)


# ----------------------------------------------------------------------------
# Parameter setup + BN folding (plain-JAX glue)
# ----------------------------------------------------------------------------
def init_params(key, F_g, F_l, F_int, dtype=jnp.float32):
    """Deterministic synthetic parameters matching Attention_block.__init__."""
    ks = jax.random.split(key, 9)
    p = {}
    # Conv2d(C_in, C_out, 1) weight: (C_out, C_in, 1, 1) -> stored as (C_out, C_in)
    p["wg_w"] = 0.1 * jax.random.normal(ks[0], (F_int, F_g), dtype)
    p["wg_b"] = 0.1 * jax.random.normal(ks[1], (F_int,), dtype)
    p["wx_w"] = 0.1 * jax.random.normal(ks[2], (F_int, F_l), dtype)
    p["wx_b"] = 0.1 * jax.random.normal(ks[3], (F_int,), dtype)
    p["psi_w"] = 0.1 * jax.random.normal(ks[4], (1, F_int), dtype)
    p["psi_b"] = 0.1 * jax.random.normal(ks[5], (1,), dtype)

    def bn(k, c):
        k1, k2, k3, k4 = jax.random.split(k, 4)
        return dict(
            gamma=1.0 + 0.05 * jax.random.normal(k1, (c,), dtype),
            beta=0.05 * jax.random.normal(k2, (c,), dtype),
            mean=0.05 * jax.random.normal(k3, (c,), dtype),
            var=1.0 + 0.05 * jax.random.uniform(k4, (c,), dtype),
        )

    p["bn_g"] = bn(ks[6], F_int)
    p["bn_x"] = bn(ks[7], F_int)
    p["bn_psi"] = bn(ks[8], 1)
    return p


def _fold_bn(conv_w, conv_b, bn, eps=1e-5):
    """Fold inference-mode BatchNorm into a 1x1 conv.

    conv_w: (C_out, C_in), conv_b: (C_out,).  Returns a (C_out, C_in) weight for
    channel-major left-multiplication and a (C_out, 1) bias column.
    """
    scale = bn["gamma"] / jnp.sqrt(bn["var"] + eps)          # (C_out,)
    w_eff = conv_w * scale[:, None]                          # (C_out, C_in)
    b_eff = (conv_b - bn["mean"]) * scale + bn["beta"]       # (C_out,)
    return w_eff, b_eff[:, None]


# ----------------------------------------------------------------------------
# Wrapper
# ----------------------------------------------------------------------------
@functools.partial(jax.jit, static_argnames=("ts", "chunk"))
def attention_block(g, x, params, *, ts=2048, chunk=8):
    """g: (N, F_g, H, W), x: (N, F_l, H, W)  ->  (N, F_l, H, W)."""
    N, F_g, H, W = g.shape
    _, F_l, _, _ = x.shape
    S = H * W

    wg, bg = _fold_bn(params["wg_w"], params["wg_b"], params["bn_g"])
    wx, bx = _fold_bn(params["wx_w"], params["wx_b"], params["bn_x"])
    wp, bp = _fold_bn(params["psi_w"], params["psi_b"], params["bn_psi"])
    F_int = wg.shape[0]
    b1 = bg + bx                    # (F_int, 1): fused bias of the two convs
    wp_col = wp.T                   # (F_int, 1): psi weight as a column

    # --- spatial tile selection --------------------------------------------
    # Only the streamed activations (g in, x in, out) count against VMEM; the
    # ReLU intermediate is chunked in-kernel.  Pallas double-buffers each stream.
    itemsize = jnp.dtype(x.dtype).itemsize
    bytes_per_col = N * (F_g + 2 * F_l) * itemsize
    budget = 8 * 1024 * 1024        # well inside the default scoped VMEM on all gens
    cap_cols = max(128, (budget // (2 * bytes_per_col)) // 128 * 128)

    if S <= 128:
        tS = S                      # single full-width block (last dim == array dim)
    else:
        s128 = _round_up(S, 128)
        tS = min(_round_up(ts, 128), s128, cap_cols)
        # keep >= 2 "parallel" grid steps when possible (v7x has 2 TensorCores)
        if pl.cdiv(S, tS) < 2 and s128 >= 256:
            tS = max(128, (s128 // 2) // 128 * 128)
    grid = (pl.cdiv(S, tS),)

    # NCHW -> (N*C, H*W): free reshape on contiguous data; fills all 8 sublanes.
    g2 = g.reshape(N * F_g, S)
    x2 = x.reshape(N * F_l, S)

    kernel = functools.partial(_attention_block_kernel, n_batch=N, f_g=F_g,
                               f_l=F_l, f_int=F_int, chunk=chunk)

    out2 = pl.pallas_call(
        kernel,
        out_shape=jax.ShapeDtypeStruct((N * F_l, S), x.dtype),
        grid_spec=pltpu.PrefetchScalarGridSpec(
            num_scalar_prefetch=0,
            grid=grid,
            in_specs=[
                pl.BlockSpec((N * F_g, tS), lambda s: (0, s)),   # g tile
                pl.BlockSpec((N * F_l, tS), lambda s: (0, s)),   # x tile
                pl.BlockSpec((F_int, F_g), lambda s: (0, 0)),    # W_g (BN folded)
                pl.BlockSpec((F_int, F_l), lambda s: (0, 0)),    # W_x (BN folded)
                pl.BlockSpec((F_int, 1), lambda s: (0, 0)),      # b_g + b_x
                pl.BlockSpec((F_int, 1), lambda s: (0, 0)),      # W_psi column
                pl.BlockSpec((1, 1), lambda s: (0, 0)),          # b_psi
            ],
            out_specs=pl.BlockSpec((N * F_l, tS), lambda s: (0, s)),
        ),
        compiler_params=pltpu.CompilerParams(
            dimension_semantics=("parallel",),
            # No hardcoded vmem_limit_bytes: the double-buffered streamed
            # footprint is far below the default scoped limit on v5e/v6e/v7x.
        ),
    )(g2, x2, wg, wx, b1, wp_col, bp)

    return out2.reshape(N, F_l, H, W)


# ----------------------------------------------------------------------------
# Pure-JAX reference (unfolded Conv -> BN path, independently checks BN folding)
# ----------------------------------------------------------------------------
def attention_block_ref(g, x, params, eps=1e-5):
    def conv1x1(w, b, t):
        return jnp.einsum("oc,nchw->nohw", w, t) + b[None, :, None, None]

    def bnorm(t, s):
        scale = s["gamma"] / jnp.sqrt(s["var"] + eps)
        return ((t - s["mean"][None, :, None, None]) * scale[None, :, None, None]
                + s["beta"][None, :, None, None])

    g1 = bnorm(conv1x1(params["wg_w"], params["wg_b"], g), params["bn_g"])
    x1 = bnorm(conv1x1(params["wx_w"], params["wx_b"], x), params["bn_x"])
    h = jnp.maximum(g1 + x1, 0.0)
    p = bnorm(conv1x1(params["psi_w"], params["psi_b"], h), params["bn_psi"])
    return x * jax.nn.sigmoid(p)


if __name__ == "__main__":
    # Small shapes consistent with the module: batch=2, F_g=F_l=4, F_int=32,
    # spatial 16x16 -> S = 256 columns, split into two 128-lane tiles.
    N, F_g, F_l, F_int, H, W = 2, 4, 4, 32, 16, 16

    key = jax.random.PRNGKey(0)
    kp, kg, kx = jax.random.split(key, 3)
    params = init_params(kp, F_g, F_l, F_int)
    g = jax.random.normal(kg, (N, F_g, H, W), jnp.float32)
    x = jax.random.normal(kx, (N, F_l, H, W), jnp.float32)

    out = attention_block(g, x, params)
    jax.block_until_ready(out)

    ref = attention_block_ref(g, x, params)
    assert out.shape == (N, F_l, H, W)
    assert jnp.allclose(out, ref, atol=1e-3, rtol=1e-3), (
        "mismatch vs reference, max abs err = "
        f"{float(jnp.max(jnp.abs(out - ref)))}")

    # Second config: spatial size that is NOT a multiple of the 128-lane tile
    # (12x12 -> S=144), exercising the truncated final block without any
    # wrapper-side padding copy.
    H2 = W2 = 12
    g_b = jax.random.normal(jax.random.PRNGKey(1), (N, F_g, H2, W2), jnp.float32)
    x_b = jax.random.normal(jax.random.PRNGKey(2), (N, F_l, H2, W2), jnp.float32)
    out_b = attention_block(g_b, x_b, params)
    jax.block_until_ready(out_b)
    ref_b = attention_block_ref(g_b, x_b, params)
    assert jnp.allclose(out_b, ref_b, atol=1e-3, rtol=1e-3), (
        "mismatch vs reference (non-divisible spatial), max abs err = "
        f"{float(jnp.max(jnp.abs(out_b - ref_b)))}")

    print("KERNEL_OK")
</pallas_src>

<mosaic_0001>
module attributes {stable_mosaic.version = 11 : i64} {
  func.func @_attention_block_kernel(%arg0: i32, %arg1: memref<8x128xf32, #tpu.memory_space<vmem>>, %arg2: memref<8x128xf32, #tpu.memory_space<vmem>>, %arg3: memref<32x4xf32, #tpu.memory_space<vmem>>, %arg4: memref<32x4xf32, #tpu.memory_space<vmem>>, %arg5: memref<32x1xf32, #tpu.memory_space<vmem>>, %arg6: memref<32x1xf32, #tpu.memory_space<vmem>>, %arg7: memref<1x1xf32, #tpu.memory_space<vmem>>, %arg8: memref<8x128xf32, #tpu.memory_space<vmem>>) attributes {dimension_semantics = [#tpu.dimension_semantics<parallel>], iteration_bounds = array<i64: 2>, scalar_prefetch = 0 : i64, scratch_operands = 0 : i64, tpu.core_type = #tpu.core_type<tc>, window_params = [{transform_indices = @transform_0, window_bounds = array<i64: 8, 128>}, {transform_indices = @transform_1, window_bounds = array<i64: 8, 128>}, {pipeline_mode = #tpu.pipeline_mode<synchronous>, transform_indices = @transform_2, window_bounds = array<i64: 32, 4>}, {pipeline_mode = #tpu.pipeline_mode<synchronous>, transform_indices = @transform_3, window_bounds = array<i64: 32, 4>}, {pipeline_mode = #tpu.pipeline_mode<synchronous>, transform_indices = @transform_4, window_bounds = array<i64: 32, 1>}, {pipeline_mode = #tpu.pipeline_mode<synchronous>, transform_indices = @transform_5, window_bounds = array<i64: 32, 1>}, {pipeline_mode = #tpu.pipeline_mode<synchronous>, transform_indices = @transform_6, window_bounds = array<i64: 1, 1>}, {transform_indices = @transform_7, window_bounds = array<i64: 8, 128>}]} {
    %c0 = arith.constant 0 : index
    %c0_0 = arith.constant 0 : index
    %0 = vector.load %arg3[%c0, %c0_0] : memref<32x4xf32, #tpu.memory_space<vmem>>, vector<32x4xf32>
    %c0_1 = arith.constant 0 : index
    %c0_2 = arith.constant 0 : index
    %1 = vector.load %arg4[%c0_1, %c0_2] : memref<32x4xf32, #tpu.memory_space<vmem>>, vector<32x4xf32>
    %c0_3 = arith.constant 0 : index
    %c0_4 = arith.constant 0 : index
    %2 = vector.load %arg5[%c0_3, %c0_4] : memref<32x1xf32, #tpu.memory_space<vmem>>, vector<32x1xf32>
    %c0_5 = arith.constant 0 : index
    %c0_6 = arith.constant 0 : index
    %3 = vector.load %arg6[%c0_5, %c0_6] : memref<32x1xf32, #tpu.memory_space<vmem>>, vector<32x1xf32>
    %c0_7 = arith.constant 0 : index
    %c0_8 = arith.constant 0 : index
    %4 = vector.load %arg7[%c0_7, %c0_8] : memref<1x1xf32, #tpu.memory_space<vmem>>, vector<1x1xf32>
    %c0_9 = arith.constant 0 : index
    %c0_10 = arith.constant 0 : index
    %5 = vector.load %arg1[%c0_9, %c0_10] : memref<8x128xf32, #tpu.memory_space<vmem>>, vector<4x128xf32>
    %c0_11 = arith.constant 0 : index
    %c0_12 = arith.constant 0 : index
    %6 = vector.load %arg2[%c0_11, %c0_12] : memref<8x128xf32, #tpu.memory_space<vmem>>, vector<4x128xf32>
    %cst = arith.constant 0.000000e+00 : f32
    %7 = vector.broadcast %cst : f32 to vector<1x128xf32>
    %8 = vector.extract_strided_slice %0 {offsets = [0, 0], sizes = [8, 4], strides = [1, 1]} : vector<32x4xf32> to vector<8x4xf32>
    %cst_13 = arith.constant dense<0.000000e+00> : vector<8x128xf32>
    %9 = tpu.matmul %8, %5, %cst_13 {dimension_numbers = #tpu.dot_dimension_numbers<[1], [0], [0], [1], [0, 0, 1, 1], [], []>} : vector<8x4xf32>, vector<4x128xf32>, vector<8x128xf32> -> vector<8x128xf32>
    %10 = vector.extract_strided_slice %1 {offsets = [0, 0], sizes = [8, 4], strides = [1, 1]} : vector<32x4xf32> to vector<8x4xf32>
    %cst_14 = arith.constant dense<0.000000e+00> : vector<8x128xf32>
    %11 = tpu.matmul %10, %6, %cst_14 {dimension_numbers = #tpu.dot_dimension_numbers<[1], [0], [0], [1], [0, 0, 1, 1], [], []>} : vector<8x4xf32>, vector<4x128xf32>, vector<8x128xf32> -> vector<8x128xf32>
    %12 = arith.addf %9, %11 : vector<8x128xf32>
    %13 = vector.extract_strided_slice %2 {offsets = [0, 0], sizes = [8, 1], strides = [1, 1]} : vector<32x1xf32> to vector<8x1xf32>
    %14 = vector.broadcast %13 : vector<8x1xf32> to vector<8x128xf32>
    %15 = arith.addf %12, %14 : vector<8x128xf32>
    %cst_15 = arith.constant 0.000000e+00 : f32
    %16 = vector.broadcast %cst_15 : f32 to vector<8x128xf32>
    %17 = arith.maximumf %15, %16 : vector<8x128xf32>
    %18 = vector.extract_strided_slice %3 {offsets = [0, 0], sizes = [8, 1], strides = [1, 1]} : vector<32x1xf32> to vector<8x1xf32>
    %19 = vector.broadcast %18 : vector<8x1xf32> to vector<8x128xf32>
    %20 = arith.mulf %17, %19 : vector<8x128xf32>
    %cst_16 = arith.constant dense<0.000000e+00> : vector<128xf32>
    %21 = vector.multi_reduction <add>, %20, %cst_16 [0] : vector<8x128xf32> to vector<128xf32>
    %22 = vector.shape_cast %21 : vector<128xf32> to vector<1x128xf32>
    %23 = arith.addf %7, %22 : vector<1x128xf32>
    %24 = vector.extract_strided_slice %0 {offsets = [8, 0], sizes = [8, 4], strides = [1, 1]} : vector<32x4xf32> to vector<8x4xf32>
    %cst_17 = arith.constant dense<0.000000e+00> : vector<8x128xf32>
    %25 = tpu.matmul %24, %5, %cst_17 {dimension_numbers = #tpu.dot_dimension_numbers<[1], [0], [0], [1], [0, 0, 1, 1], [], []>} : vector<8x4xf32>, vector<4x128xf32>, vector<8x128xf32> -> vector<8x128xf32>
    %26 = vector.extract_strided_slice %1 {offsets = [8, 0], sizes = [8, 4], strides = [1, 1]} : vector<32x4xf32> to vector<8x4xf32>
    %cst_18 = arith.constant dense<0.000000e+00> : vector<8x128xf32>
    %27 = tpu.matmul %26, %6, %cst_18 {dimension_numbers = #tpu.dot_dimension_numbers<[1], [0], [0], [1], [0, 0, 1, 1], [], []>} : vector<8x4xf32>, vector<4x128xf32>, vector<8x128xf32> -> vector<8x128xf32>
    %28 = arith.addf %25, %27 : vector<8x128xf32>
    %29 = vector.extract_strided_slice %2 {offsets = [8, 0], sizes = [8, 1], strides = [1, 1]} : vector<32x1xf32> to vector<8x1xf32>
    %30 = vector.broadcast %29 : vector<8x1xf32> to vector<8x128xf32>
    %31 = arith.addf %28, %30 : vector<8x128xf32>
    %cst_19 = arith.constant 0.000000e+00 : f32
    %32 = vector.broadcast %cst_19 : f32 to vector<8x128xf32>
    %33 = arith.maximumf %31, %32 : vector<8x128xf32>
    %34 = vector.extract_strided_slice %3 {offsets = [8, 0], sizes = [8, 1], strides = [1, 1]} : vector<32x1xf32> to vector<8x1xf32>
    %35 = vector.broadcast %34 : vector<8x1xf32> to vector<8x128xf32>
    %36 = arith.mulf %33, %35 : vector<8x128xf32>
    %cst_20 = arith.constant dense<0.000000e+00> : vector<128xf32>
    %37 = vector.multi_reduction <add>, %36, %cst_20 [0] : vector<8x128xf32> to vector<128xf32>
    %38 = vector.shape_cast %37 : vector<128xf32> to vector<1x128xf32>
    %39 = arith.addf %23, %38 : vector<1x128xf32>
    %40 = vector.extract_strided_slice %0 {offsets = [16, 0], sizes = [8, 4], strides = [1, 1]} : vector<32x4xf32> to vector<8x4xf32>
    %cst_21 = arith.constant dense<0.000000e+00> : vector<8x128xf32>
    %41 = tpu.matmul %40, %5, %cst_21 {dimension_numbers = #tpu.dot_dimension_numbers<[1], [0], [0], [1], [0, 0, 1, 1], [], []>} : vector<8x4xf32>, vector<4x128xf32>, vector<8x128xf32> -> vector<8x128xf32>
    %42 = vector.extract_strided_slice %1 {offsets = [16, 0], sizes = [8, 4], strides = [1, 1]} : vector<32x4xf32> to vector<8x4xf32>
    %cst_22 = arith.constant dense<0.000000e+00> : vector<8x128xf32>
    %43 = tpu.matmul %42, %6, %cst_22 {dimension_numbers = #tpu.dot_dimension_numbers<[1], [0], [0], [1], [0, 0, 1, 1], [], []>} : vector<8x4xf32>, vector<4x128xf32>, vector<8x128xf32> -> vector<8x128xf32>
    %44 = arith.addf %41, %43 : vector<8x128xf32>
    %45 = vector.extract_strided_slice %2 {offsets = [16, 0], sizes = [8, 1], strides = [1, 1]} : vector<32x1xf32> to vector<8x1xf32>
    %46 = vector.broadcast %45 : vector<8x1xf32> to vector<8x128xf32>
    %47 = arith.addf %44, %46 : vector<8x128xf32>
    %cst_23 = arith.constant 0.000000e+00 : f32
    %48 = vector.broadcast %cst_23 : f32 to vector<8x128xf32>
    %49 = arith.maximumf %47, %48 : vector<8x128xf32>
    %50 = vector.extract_strided_slice %3 {offsets = [16, 0], sizes = [8, 1], strides = [1, 1]} : vector<32x1xf32> to vector<8x1xf32>
    %51 = vector.broadcast %50 : vector<8x1xf32> to vector<8x128xf32>
    %52 = arith.mulf %49, %51 : vector<8x128xf32>
    %cst_24 = arith.constant dense<0.000000e+00> : vector<128xf32>
    %53 = vector.multi_reduction <add>, %52, %cst_24 [0] : vector<8x128xf32> to vector<128xf32>
    %54 = vector.shape_cast %53 : vector<128xf32> to vector<1x128xf32>
    %55 = arith.addf %39, %54 : vector<1x128xf32>
    %56 = vector.extract_strided_slice %0 {offsets = [24, 0], sizes = [8, 4], strides = [1, 1]} : vector<32x4xf32> to vector<8x4xf32>
    %cst_25 = arith.constant dense<0.000000e+00> : vector<8x128xf32>
    %57 = tpu.matmul %56, %5, %cst_25 {dimension_numbers = #tpu.dot_dimension_numbers<[1], [0], [0], [1], [0, 0, 1, 1], [], []>} : vector<8x4xf32>, vector<4x128xf32>, vector<8x128xf32> -> vector<8x128xf32>
    %58 = vector.extract_strided_slice %1 {offsets = [24, 0], sizes = [8, 4], strides = [1, 1]} : vector<32x4xf32> to vector<8x4xf32>
    %cst_26 = arith.constant dense<0.000000e+00> : vector<8x128xf32>
    %59 = tpu.matmul %58, %6, %cst_26 {dimension_numbers = #tpu.dot_dimension_numbers<[1], [0], [0], [1], [0, 0, 1, 1], [], []>} : vector<8x4xf32>, vector<4x128xf32>, vector<8x128xf32> -> vector<8x128xf32>
    %60 = arith.addf %57, %59 : vector<8x128xf32>
    %61 = vector.extract_strided_slice %2 {offsets = [24, 0], sizes = [8, 1], strides = [1, 1]} : vector<32x1xf32> to vector<8x1xf32>
    %62 = vector.broadcast %61 : vector<8x1xf32> to vector<8x128xf32>
    %63 = arith.addf %60, %62 : vector<8x128xf32>
    %cst_27 = arith.constant 0.000000e+00 : f32
    %64 = vector.broadcast %cst_27 : f32 to vector<8x128xf32>
    %65 = arith.maximumf %63, %64 : vector<8x128xf32>
    %66 = vector.extract_strided_slice %3 {offsets = [24, 0], sizes = [8, 1], strides = [1, 1]} : vector<32x1xf32> to vector<8x1xf32>
    %67 = vector.broadcast %66 : vector<8x1xf32> to vector<8x128xf32>
    %68 = arith.mulf %65, %67 : vector<8x128xf32>
    %cst_28 = arith.constant dense<0.000000e+00> : vector<128xf32>
    %69 = vector.multi_reduction <add>, %68, %cst_28 [0] : vector<8x128xf32> to vector<128xf32>
    %70 = vector.shape_cast %69 : vector<128xf32> to vector<1x128xf32>
    %71 = arith.addf %55, %70 : vector<1x128xf32>
    %72 = vector.broadcast %4 : vector<1x1xf32> to vector<1x128xf32>
    %73 = arith.addf %71, %72 : vector<1x128xf32>
    %74 = arith.negf %73 : vector<1x128xf32>
    %75 = math.exp %74 : vector<1x128xf32>
    %cst_29 = arith.constant 1.000000e+00 : f32
    %76 = vector.broadcast %cst_29 : f32 to vector<1x128xf32>
    %77 = arith.addf %76, %75 : vector<1x128xf32>
    %78 = arith.divf %76, %77 : vector<1x128xf32>
    %79 = vector.broadcast %78 : vector<1x128xf32> to vector<4x128xf32>
    %80 = arith.mulf %6, %79 : vector<4x128xf32>
    %c0_30 = arith.constant 0 : index
    %c0_31 = arith.constant 0 : index
    %81 = vector.load %arg8[%c0_30, %c0_31] : memref<8x128xf32, #tpu.memory_space<vmem>>, vector<4x128xf32>
    tpu.vector_store %arg8[%c0_30, %c0_31], %80 {strides = array<i32>} : memref<8x128xf32, #tpu.memory_space<vmem>>, vector<4x128xf32>,
    %c4 = arith.constant 4 : index
    %c0_32 = arith.constant 0 : index
    %82 = vector.load %arg1[%c4, %c0_32] : memref<8x128xf32, #tpu.memory_space<vmem>>, vector<4x128xf32>
    %c4_33 = arith.constant 4 : index
    %c0_34 = arith.constant 0 : index
    %83 = vector.load %arg2[%c4_33, %c0_34] : memref<8x128xf32, #tpu.memory_space<vmem>>, vector<4x128xf32>
    %cst_35 = arith.constant 0.000000e+00 : f32
    %84 = vector.broadcast %cst_35 : f32 to vector<1x128xf32>
    %85 = vector.extract_strided_slice %0 {offsets = [0, 0], sizes = [8, 4], strides = [1, 1]} : vector<32x4xf32> to vector<8x4xf32>
    %cst_36 = arith.constant dense<0.000000e+00> : vector<8x128xf32>
    %86 = tpu.matmul %85, %82, %cst_36 {dimension_numbers = #tpu.dot_dimension_numbers<[1], [0], [0], [1], [0, 0, 1, 1], [], []>} : vector<8x4xf32>, vector<4x128xf32>, vector<8x128xf32> -> vector<8x128xf32>
    %87 = vector.extract_strided_slice %1 {offsets = [0, 0], sizes = [8, 4], strides = [1, 1]} : vector<32x4xf32> to vector<8x4xf32>
    %cst_37 = arith.constant dense<0.000000e+00> : vector<8x128xf32>
    %88 = tpu.matmul %87, %83, %cst_37 {dimension_numbers = #tpu.dot_dimension_numbers<[1], [0], [0], [1], [0, 0, 1, 1], [], []>} : vector<8x4xf32>, vector<4x128xf32>, vector<8x128xf32> -> vector<8x128xf32>
    %89 = arith.addf %86, %88 : vector<8x128xf32>
    %90 = vector.extract_strided_slice %2 {offsets = [0, 0], sizes = [8, 1], strides = [1, 1]} : vector<32x1xf32> to vector<8x1xf32>
    %91 = vector.broadcast %90 : vector<8x1xf32> to vector<8x128xf32>
    %92 = arith.addf %89, %91 : vector<8x128xf32>
    %cst_38 = arith.constant 0.000000e+00 : f32
    %93 = vector.broadcast %cst_38 : f32 to vector<8x128xf32>
    %94 = arith.maximumf %92, %93 : vector<8x128xf32>
    %95 = vector.extract_strided_slice %3 {offsets = [0, 0], sizes = [8, 1], strides = [1, 1]} : vector<32x1xf32> to vector<8x1xf32>
    %96 = vector.broadcast %95 : vector<8x1xf32> to vector<8x128xf32>
    %97 = arith.mulf %94, %96 : vector<8x128xf32>
    %cst_39 = arith.constant dense<0.000000e+00> : vector<128xf32>
    %98 = vector.multi_reduction <add>, %97, %cst_39 [0] : vector<8x128xf32> to vector<128xf32>
    %99 = vector.shape_cast %98 : vector<128xf32> to vector<1x128xf32>
    %100 = arith.addf %84, %99 : vector<1x128xf32>
    %101 = vector.extract_strided_slice %0 {offsets = [8, 0], sizes = [8, 4], strides = [1, 1]} : vector<32x4xf32> to vector<8x4xf32>
    %cst_40 = arith.constant dense<0.000000e+00> : vector<8x128xf32>
    %102 = tpu.matmul %101, %82, %cst_40 {dimension_numbers = #tpu.dot_dimension_numbers<[1], [0], [0], [1], [0, 0, 1, 1], [], []>} : vector<8x4xf32>, vector<4x128xf32>, vector<8x128xf32> -> vector<8x128xf32>
    %103 = vector.extract_strided_slice %1 {offsets = [8, 0], sizes = [8, 4], strides = [1, 1]} : vector<32x4xf32> to vector<8x4xf32>
    %cst_41 = arith.constant dense<0.000000e+00> : vector<8x128xf32>
    %104 = tpu.matmul %103, %83, %cst_41 {dimension_numbers = #tpu.dot_dimension_numbers<[1], [0], [0], [1], [0, 0, 1, 1], [], []>} : vector<8x4xf32>, vector<4x128xf32>, vector<8x128xf32> -> vector<8x128xf32>
    %105 = arith.addf %102, %104 : vector<8x128xf32>
    %106 = vector.extract_strided_slice %2 {offsets = [8, 0], sizes = [8, 1], strides = [1, 1]} : vector<32x1xf32> to vector<8x1xf32>
    %107 = vector.broadcast %106 : vector<8x1xf32> to vector<8x128xf32>
    %108 = arith.addf %105, %107 : vector<8x128xf32>
    %cst_42 = arith.constant 0.000000e+00 : f32
    %109 = vector.broadcast %cst_42 : f32 to vector<8x128xf32>
    %110 = arith.maximumf %108, %109 : vector<8x128xf32>
    %111 = vector.extract_strided_slice %3 {offsets = [8, 0], sizes = [8, 1], strides = [1, 1]} : vector<32x1xf32> to vector<8x1xf32>
    %112 = vector.broadcast %111 : vector<8x1xf32> to vector<8x128xf32>
    %113 = arith.mulf %110, %112 : vector<8x128xf32>
    %cst_43 = arith.constant dense<0.000000e+00> : vector<128xf32>
    %114 = vector.multi_reduction <add>, %113, %cst_43 [0] : vector<8x128xf32> to vector<128xf32>
    %115 = vector.shape_cast %114 : vector<128xf32> to vector<1x128xf32>
    %116 = arith.addf %100, %115 : vector<1x128xf32>
    %117 = vector.extract_strided_slice %0 {offsets = [16, 0], sizes = [8, 4], strides = [1, 1]} : vector<32x4xf32> to vector<8x4xf32>
    %cst_44 = arith.constant dense<0.000000e+00> : vector<8x128xf32>
    %118 = tpu.matmul %117, %82, %cst_44 {dimension_numbers = #tpu.dot_dimension_numbers<[1], [0], [0], [1], [0, 0, 1, 1], [], []>} : vector<8x4xf32>, vector<4x128xf32>, vector<8x128xf32> -> vector<8x128xf32>
    %119 = vector.extract_strided_slice %1 {offsets = [16, 0], sizes = [8, 4], strides = [1, 1]} : vector<32x4xf32> to vector<8x4xf32>
    %cst_45 = arith.constant dense<0.000000e+00> : vector<8x128xf32>
    %120 = tpu.matmul %119, %83, %cst_45 {dimension_numbers = #tpu.dot_dimension_numbers<[1], [0], [0], [1], [0, 0, 1, 1], [], []>} : vector<8x4xf32>, vector<4x128xf32>, vector<8x128xf32> -> vector<8x128xf32>
    %121 = arith.addf %118, %120 : vector<8x128xf32>
    %122 = vector.extract_strided_slice %2 {offsets = [16, 0], sizes = [8, 1], strides = [1, 1]} : vector<32x1xf32> to vector<8x1xf32>
    %123 = vector.broadcast %122 : vector<8x1xf32> to vector<8x128xf32>
    %124 = arith.addf %121, %123 : vector<8x128xf32>
    %cst_46 = arith.constant 0.000000e+00 : f32
    %125 = vector.broadcast %cst_46 : f32 to vector<8x128xf32>
    %126 = arith.maximumf %124, %125 : vector<8x128xf32>
    %127 = vector.extract_strided_slice %3 {offsets = [16, 0], sizes = [8, 1], strides = [1, 1]} : vector<32x1xf32> to vector<8x1xf32>
    %128 = vector.broadcast %127 : vector<8x1xf32> to vector<8x128xf32>
    %129 = arith.mulf %126, %128 : vector<8x128xf32>
    %cst_47 = arith.constant dense<0.000000e+00> : vector<128xf32>
    %130 = vector.multi_reduction <add>, %129, %cst_47 [0] : vector<8x128xf32> to vector<128xf32>
    %131 = vector.shape_cast %130 : vector<128xf32> to vector<1x128xf32>
    %132 = arith.addf %116, %131 : vector<1x128xf32>
    %133 = vector.extract_strided_slice %0 {offsets = [24, 0], sizes = [8, 4], strides = [1, 1]} : vector<32x4xf32> to vector<8x4xf32>
    %cst_48 = arith.constant dense<0.000000e+00> : vector<8x128xf32>
    %134 = tpu.matmul %133, %82, %cst_48 {dimension_numbers = #tpu.dot_dimension_numbers<[1], [0], [0], [1], [0, 0, 1, 1], [], []>} : vector<8x4xf32>, vector<4x128xf32>, vector<8x128xf32> -> vector<8x128xf32>
    %135 = vector.extract_strided_slice %1 {offsets = [24, 0], sizes = [8, 4], strides = [1, 1]} : vector<32x4xf32> to vector<8x4xf32>
    %cst_49 = arith.constant dense<0.000000e+00> : vector<8x128xf32>
    %136 = tpu.matmul %135, %83, %cst_49 {dimension_numbers = #tpu.dot_dimension_numbers<[1], [0], [0], [1], [0, 0, 1, 1], [], []>} : vector<8x4xf32>, vector<4x128xf32>, vector<8x128xf32> -> vector<8x128xf32>
    %137 = arith.addf %134, %136 : vector<8x128xf32>
    %138 = vector.extract_strided_slice %2 {offsets = [24, 0], sizes = [8, 1], strides = [1, 1]} : vector<32x1xf32> to vector<8x1xf32>
    %139 = vector.broadcast %138 : vector<8x1xf32> to vector<8x128xf32>
    %140 = arith.addf %137, %139 : vector<8x128xf32>
    %cst_50 = arith.constant 0.000000e+00 : f32
    %141 = vector.broadcast %cst_50 : f32 to vector<8x128xf32>
    %142 = arith.maximumf %140, %141 : vector<8x128xf32>
    %143 = vector.extract_strided_slice %3 {offsets = [24, 0], sizes = [8, 1], strides = [1, 1]} : vector<32x1xf32> to vector<8x1xf32>
    %144 = vector.broadcast %143 : vector<8x1xf32> to vector<8x128xf32>
    %145 = arith.mulf %142, %144 : vector<8x128xf32>
    %cst_51 = arith.constant dense<0.000000e+00> : vector<128xf32>
    %146 = vector.multi_reduction <add>, %145, %cst_51 [0] : vector<8x128xf32> to vector<128xf32>
    %147 = vector.shape_cast %146 : vector<128xf32> to vector<1x128xf32>
    %148 = arith.addf %132, %147 : vector<1x128xf32>
    %149 = vector.broadcast %4 : vector<1x1xf32> to vector<1x128xf32>
    %150 = arith.addf %148, %149 : vector<1x128xf32>
    %151 = arith.negf %150 : vector<1x128xf32>
    %152 = math.exp %151 : vector<1x128xf32>
    %cst_52 = arith.constant 1.000000e+00 : f32
    %153 = vector.broadcast %cst_52 : f32 to vector<1x128xf32>
    %154 = arith.addf %153, %152 : vector<1x128xf32>
    %155 = arith.divf %153, %154 : vector<1x128xf32>
    %156 = vector.broadcast %155 : vector<1x128xf32> to vector<4x128xf32>
    %157 = arith.mulf %83, %156 : vector<4x128xf32>
    %c4_53 = arith.constant 4 : index
    %c0_54 = arith.constant 0 : index
    %158 = vector.load %arg8[%c4_53, %c0_54] : memref<8x128xf32, #tpu.memory_space<vmem>>, vector<4x128xf32>
    tpu.vector_store %arg8[%c4_53, %c0_54], %157 {strides = array<i32>} : memref<8x128xf32, #tpu.memory_space<vmem>>, vector<4x128xf32>,
    return
  }
  func.func @transform_0(%arg0: i32) -> (i32, i32) {
    %c0_i32 = arith.constant 0 : i32
    %c0_i32_0 = arith.constant 0 : i32
    return %c0_i32, %arg0 : i32, i32
  }
  func.func @transform_1(%arg0: i32) -> (i32, i32) {
    %c0_i32 = arith.constant 0 : i32
    %c0_i32_0 = arith.constant 0 : i32
    return %c0_i32, %arg0 : i32, i32
  }
  func.func @transform_2(%arg0: i32) -> (i32, i32) {
    %c0_i32 = arith.constant 0 : i32
    %c0_i32_0 = arith.constant 0 : i32
    %c0_i32_1 = arith.constant 0 : i32
    return %c0_i32, %c0_i32_0 : i32, i32
  }
  func.func @transform_3(%arg0: i32) -> (i32, i32) {
    %c0_i32 = arith.constant 0 : i32
    %c0_i32_0 = arith.constant 0 : i32
    %c0_i32_1 = arith.constant 0 : i32
    return %c0_i32, %c0_i32_0 : i32, i32
  }
  func.func @transform_4(%arg0: i32) -> (i32, i32) {
    %c0_i32 = arith.constant 0 : i32
    %c0_i32_0 = arith.constant 0 : i32
    %c0_i32_1 = arith.constant 0 : i32
    return %c0_i32, %c0_i32_0 : i32, i32
  }
  func.func @transform_5(%arg0: i32) -> (i32, i32) {
    %c0_i32 = arith.constant 0 : i32
    %c0_i32_0 = arith.constant 0 : i32
    %c0_i32_1 = arith.constant 0 : i32
    return %c0_i32, %c0_i32_0 : i32, i32
  }
  func.func @transform_6(%arg0: i32) -> (i32, i32) {
    %c0_i32 = arith.constant 0 : i32
    %c0_i32_0 = arith.constant 0 : i32
    %c0_i32_1 = arith.constant 0 : i32
    return %c0_i32, %c0_i32_0 : i32, i32
  }
  func.func @transform_7(%arg0: i32) -> (i32, i32) {
    %c0_i32 = arith.constant 0 : i32
    %c0_i32_0 = arith.constant 0 : i32
    return %c0_i32, %arg0 : i32, i32
  }
}

</mosaic_0001>

<bundles_post_ra>
// kernel: attention_block.1
= control target key start
LH: loop header
LB: loop body
LE: loop exit
PB: predicated region body
PF: predicated region fallthrough
CT: control target
= control target key end

     0   :  { %s1915_s26 = smov 0   ;;  %s2114_s0 = inlined_call_operand.vmem [shape: f32[8,256], index: 0, kind: input, shape index: {}]   ;;  %s2115_s1 = inlined_call_operand.vmem [shape: f32[8,256], index: 1, kind: input, shape index: {}]   ;;  %s2116_s2 = inlined_call_operand.vmem [shape: f32[32,4], index: 2, kind: input, shape index: {}]   ;;  %s2117_s3 = inlined_call_operand.vmem [shape: f32[32,4], index: 3, kind: input, shape index: {}]   ;;  %s2118_s4 = inlined_call_operand.vmem [shape: f32[32,1], index: 4, kind: input, shape index: {}]   ;;  %s2119_s5 = inlined_call_operand.vmem [shape: f32[32,1], index: 5, kind: input, shape index: {}]   ;;  %s2120_s6 = inlined_call_operand.<no memory space> [shape: f32[1,1], index: 6, kind: input, shape index: {}]   ;;  %s2121_s7 = inlined_call_operand.vmem [shape: f32[8,256], index: 7, kind: output, shape index: {}]  }
   0x1   :  { %v12_v0 = vstv %s2120_s6 }
   0x2   :  { %13 = vst [vmem:[#allocation2] sm:$0x1] %v12_v0 }
   0x3 LB: > { %s1684_s27 = sadd.s32 4294967295, %s1867_s26   ;;  %p1688_p0 = scmp.ge.s32.totalorder %s1867_s26, 1  ;;  %s1867_s26 = sphi %s1915_s26, %s19_s26  }
   0x4   : > { %p247_p1 = scmp.lt.s32.totalorder %s1867_s26, 3 }
   0x6   : > { %p248_p2 = pnand %p1688_p0, %p247_p1 }
   0x7   : > { %p281_p3 = scmp.lt.s32.totalorder (!%p248_p2), %s1684_s27, 1 }
   0x8   : > { %251 = sbr.rel (%p248_p2) target bundleno = 300 (0x12c), region = 48 }
   0xd   : > { %v1869_v1 = vmov 0.0   ;;  %s2123_s27 = smov (!%p281_p3, %s1684_s27), 1  ;;  %vm1870_vm0 = vmmov 0   ;;  %v1871_v2 = vmov 0   ;;  %v303_v3 = vld [vmem:[%s2118_s4 + $0x10] sm:$0xff]  ;;  %v301_v4 = vld [vmem:[%s2118_s4] sm:$0xff] }
   0xe   : > { %1760 = vmatprep.subr.mxu0 %v1869_v1  ;;  %1765 = vmatprep.subr.mxu1 %v1869_v1  ;;  %s1935_s8 = sshll.u32 %s2123_s27, 3  ;;  %vm316_vm1 = vcmask 1043456   ;;  %v297_v5 = vld [vmem:[%s2117_s3] sm:$0xff]  ;;  %vm312_vm2 = vcmask 31744   ;;  %v298_v9 = vld [vmem:[%s2117_s3 + $0x8] sm:$0xff]  ;;  %v299_v11 = vld [vmem:[%s2117_s3 + $0x10] sm:$0xff] }
   0xf   : > { %1762 = vmatprep.mubr.msk.f32.mxu0 %vm1870_vm0, %v1869_v1  ;;  %1767 = vmatprep.mubr.msk.f32.mxu1 %vm1870_vm0, %v1869_v1  ;;  %s1941_s11 = scalar_lea.vmem %s2115_s1, %s1935_s8  ;;  %s1953_s16 = scalar_lea.vmem %s2114_s0, %s1935_s8  ;;  %v293_v7 = vld [vmem:[%s2116_s2] sm:$0xff]  ;;  %v294_v10 = vld [vmem:[%s2116_s2 + $0x8] sm:$0xff]  ;;  %v295_v12 = vld [vmem:[%s2116_s2 + $0x10] sm:$0xff] }
  0x10   : > { %1852 = vset.pattern.permute.xlu1 %v1871_v2  ;;  %1851 = vset.pattern.permute.xlu0 %v1871_v2  ;;  %v1947_v6 = vld [vmem:[%s1941_s11] sm:$0xf]  ;;  %v300_v13 = vld [vmem:[%s2117_s3 + $0x18] sm:$0xff]  ;;  %v2012_v15 = vld [vmem:[%s1941_s11 + $0x4] sm:$0xf]  ;;  %s292_s23 = scalar_lea.vmem %s2121_s7, %s1935_s8 }
  0x11   : > { %800 = vperm.xlu1 %1852, %v303_v3   ;;  %468 = vperm.xlu0 %1851, %v301_v4   ;;  %v310_v8 = vld [vmem:[%s1953_s16] sm:$0xf]  ;;  %v296_v14 = vld [vmem:[%s2116_s2 + $0x18] sm:$0xff]  ;;  %v1002_v16 = vld [vmem:[%s1953_s16 + $0x4] sm:$0xf] }
  0x12   : > { %1761 = vmatpush3.msk.msra.mxu0 %vm316_vm1, %v1947_v6  ;;  %1766 = vmatpush3.msk.msra.mxu1 %vm316_vm1, %v310_v8  ;;  %v305_v17 = vld [vmem:[%s2119_s5] sm:$0xff]  ;;  %v302_v18 = vld [vmem:[%s2118_s4 + $0x8] sm:$0xff]  ;;  %v304_v19 = vld [vmem:[%s2118_s4 + $0x18] sm:$0xff] }
  0x13   : > { %1763 = vmatmul.mubr.msk.f32.vlgmr.msra.gmra.mxu0 %vm312_vm2, %v297_v5  ;;  %1768 = vmatmul.mubr.msk.f32.vlgmr.msra.gmra.mxu1 %vm312_vm2, %v293_v7  ;;  %v306_v20 = vld [vmem:[%s2119_s5 + $0x8] sm:$0xff]  ;;  %v308_v21 = vld [vmem:[%s2119_s5 + $0x18] sm:$0xff]  ;;  %v307_v22 = vld [vmem:[%s2119_s5 + $0x10] sm:$0xff] }
  0x14   : > { %1770 = vmatprep.subr.mxu0 %v1869_v1  ;;  %1775 = vmatprep.subr.mxu1 %v1869_v1  ;;  %v309_v23 = vld [vmem:[#allocation2] sm:$0x1] }
  0x15   : > { %1771 = vmatpush3.msk.msra.mxu0 %vm316_vm1, %v1947_v6  ;;  %1776 = vmatpush3.msk.msra.mxu1 %vm316_vm1, %v310_v8 }
  0x16   : > { %1772 = vmatprep.mubr.msk.f32.mxu0 %vm1870_vm0, %v1869_v1  ;;  %1777 = vmatprep.mubr.msk.f32.mxu1 %vm1870_vm0, %v1869_v1 }
  0x17   : > { %1773 = vmatmul.mubr.msk.f32.vlgmr.msra.gmra.mxu0 %vm312_vm2, %v298_v9  ;;  %1778 = vmatmul.mubr.msk.f32.vlgmr.msra.gmra.mxu1 %vm312_vm2, %v294_v10 }
  0x18   : > { %1780 = vmatprep.subr.mxu0 %v1869_v1  ;;  %1785 = vmatprep.subr.mxu1 %v1869_v1 }
  0x19   : > { %1781 = vmatpush3.msk.msra.mxu0 %vm316_vm1, %v1947_v6  ;;  %1786 = vmatpush3.msk.msra.mxu1 %vm316_vm1, %v310_v8 }
  0x1a   : > { %1782 = vmatprep.mubr.msk.f32.mxu0 %vm1870_vm0, %v1869_v1  ;;  %1787 = vmatprep.mubr.msk.f32.mxu1 %vm1870_vm0, %v1869_v1 }
  0x1b   : > { %1783 = vmatmul.mubr.msk.f32.vlgmr.msra.gmra.mxu0 %vm312_vm2, %v299_v11  ;;  %1788 = vmatmul.mubr.msk.f32.vlgmr.msra.gmra.mxu1 %vm312_vm2, %v295_v12 }
  0x1c   : > { %1790 = vmatprep.subr.mxu0 %v1869_v1  ;;  %1795 = vmatprep.subr.mxu1 %v1869_v1 }
  0x1d   : > { %1791 = vmatpush3.msk.msra.mxu0 %vm316_vm1, %v1947_v6  ;;  %1796 = vmatpush3.msk.msra.mxu1 %vm316_vm1, %v310_v8 }
  0x1e   : > { %1792 = vmatprep.mubr.msk.f32.mxu0 %vm1870_vm0, %v1869_v1  ;;  %1797 = vmatprep.mubr.msk.f32.mxu1 %vm1870_vm0, %v1869_v1 }
  0x1f   : > { %1793 = vmatmul.mubr.msk.f32.vlgmr.msra.gmra.mxu0 %vm312_vm2, %v300_v13  ;;  %1798 = vmatmul.mubr.msk.f32.vlgmr.msra.gmra.mxu1 %vm312_vm2, %v296_v14 }
  0x20   : > { %1800 = vmatprep.subr.mxu0 %v1869_v1  ;;  %1805 = vmatprep.subr.mxu1 %v1869_v1 }
  0x21   : > { %1801 = vmatpush3.msk.msra.mxu0 %vm316_vm1, %v2012_v15  ;;  %1806 = vmatpush3.msk.msra.mxu1 %vm316_vm1, %v1002_v16 }
  0x22   : > { %1802 = vmatprep.mubr.msk.f32.mxu0 %vm1870_vm0, %v1869_v1  ;;  %1807 = vmatprep.mubr.msk.f32.mxu1 %vm1870_vm0, %v1869_v1 }
  0x23   : > { %1803 = vmatmul.mubr.msk.f32.vlgmr.msra.gmra.mxu0 %vm312_vm2, %v297_v5  ;;  %1808 = vmatmul.mubr.msk.f32.vlgmr.msra.gmra.mxu1 %vm312_vm2, %v293_v7 }
  0x24   : > { %1810 = vmatprep.subr.mxu0 %v1869_v1  ;;  %1815 = vmatprep.subr.mxu1 %v1869_v1 }
  0x25   : > { %1811 = vmatpush3.msk.msra.mxu0 %vm316_vm1, %v2012_v15  ;;  %1816 = vmatpush3.msk.msra.mxu1 %vm316_vm1, %v1002_v16 }
  0x26   : > { %1812 = vmatprep.mubr.msk.f32.mxu0 %vm1870_vm0, %v1869_v1  ;;  %1817 = vmatprep.mubr.msk.f32.mxu1 %vm1870_vm0, %v1869_v1 }
  0x27   : > { %1813 = vmatmul.mubr.msk.f32.vlgmr.msra.gmra.mxu0 %vm312_vm2, %v298_v9  ;;  %1818 = vmatmul.mubr.msk.f32.vlgmr.msra.gmra.mxu1 %vm312_vm2, %v294_v10 }
  0x28   : > { %1820 = vmatprep.subr.mxu0 %v1869_v1  ;;  %1825 = vmatprep.subr.mxu1 %v1869_v1 }
  0x29   : > { %1821 = vmatpush3.msk.msra.mxu0 %vm316_vm1, %v2012_v15  ;;  %1826 = vmatpush3.msk.msra.mxu1 %vm316_vm1, %v1002_v16 }
  0x2a   : > { %1822 = vmatprep.mubr.msk.f32.mxu0 %vm1870_vm0, %v1869_v1  ;;  %1827 = vmatprep.mubr.msk.f32.mxu1 %vm1870_vm0, %v1869_v1 }
  0x2b   : > { %1823 = vmatmul.mubr.msk.f32.vlgmr.msra.gmra.mxu0 %vm312_vm2, %v299_v11  ;;  %1828 = vmatmul.mubr.msk.f32.vlgmr.msra.gmra.mxu1 %vm312_vm2, %v295_v12 }
  0x2c   : > { %1830 = vmatprep.subr.mxu0 %v1869_v1  ;;  %1835 = vmatprep.subr.mxu1 %v1869_v1 }
  0x2d   : > { %1831 = vmatpush3.msk.msra.mxu0 %vm316_vm1, %v2012_v15  ;;  %1836 = vmatpush3.msk.msra.mxu1 %vm316_vm1, %v1002_v16 }
  0x2e   : > { %1832 = vmatprep.mubr.msk.f32.mxu0 %vm1870_vm0, %v1869_v1  ;;  %1837 = vmatprep.mubr.msk.f32.mxu1 %vm1870_vm0, %v1869_v1 }
  0x2f   : > { %1833 = vmatmul.mubr.msk.f32.vlgmr.msra.gmra.mxu0 %vm312_vm2, %v300_v13  ;;  %1838 = vmatmul.mubr.msk.f32.vlgmr.msra.gmra.mxu1 %vm312_vm2, %v296_v14 }
  0x30   : > { %475 = vperm.xlu1 %1852, %v305_v17   ;;  %634 = vperm.xlu0 %1851, %v302_v18  }
  0x34   : > { %966 = vperm.xlu1 %1852, %v304_v19   ;;  %641 = vperm.xlu0 %1851, %v306_v20   ;;  %v989_v20 = vlaneseq }
  0x38   : > { %973 = vperm.xlu1 %1852, %v308_v21   ;;  %807 = vperm.xlu0 %1851, %v307_v22  }
  0x3c   : > { %986 = vperm.xlu0 %1851, %v309_v23  }
  0x8c   : > { %v469_v24 = vpop.permute.xlu0 %468  ;;  %v2081_v25 = vpop.permute.xlu1 %800 }
  0xab   : > { %v2083_v28 = vpop.permute.xlu0 %634  ;;  %v476_v35 = vpop.permute.xlu1 %475 }
  0xaf   : > { %v2085_v40 = vpop.permute.xlu0 %641  ;;  %v2088_v50 = vpop.permute.xlu1 %966 }
  0xb3   : > { %v2092_v56 = vpop.permute.xlu0 %807  ;;  %v2096_v4 = vpop.permute.xlu1 %973 }
  0xd3   : > { %v386_v26 = vpop.f32.mrf.mxu0  ;;  %v462_v27 = vpop.f32.mrf.mxu1 }
  0xd4   : > { %v463_v29 = vadd.f32 %v462_v27, %v386_v26 }
  0xd5   : > { %v1764_v30 = vpop.f32.mrf.mxu0  ;;  %v1769_v31 = vpop.f32.mrf.mxu1 }
  0xd6   : > { %v471_v32 = vadd.f32 %v469_v24, %v463_v29 }
  0xd7   : > { %v555_v33 = vpop.f32.mrf.mxu0  ;;  %v628_v34 = vpop.f32.mrf.mxu1 }
  0xd8   : > { %v472_v36 = vmax.f32 %v471_v32, 0.0  ;;  %v629_v37 = vadd.f32 %v628_v34, %v555_v33 }
  0xd9   : > { %v1774_v38 = vpop.f32.mrf.mxu0  ;;  %v1779_v39 = vpop.f32.mrf.mxu1 }
  0xda   : > { %v478_v41 = vmul.f32 %v476_v35, %v472_v36  ;;  %v637_v42 = vadd.f32 %v2083_v28, %v629_v37 }
  0xdb   : > { %v721_v43 = vpop.f32.mrf.mxu0  ;;  %v794_v44 = vpop.f32.mrf.mxu1 }
  0xdc   : > { %v479_v45 = vrot.slane %v478_v41, 4  ;;  %v638_v46 = vmax.f32 %v637_v42, 0.0  ;;  %v795_v47 = vadd.f32 %v794_v44, %v721_v43  ;;  %v990_v43 = vshrl.u32 %v989_v20, 7 }
  0xdd   : > { %v1784_v48 = vpop.f32.mrf.mxu0  ;;  %v1789_v49 = vpop.f32.mrf.mxu1 }
  0xde   : > { %v480_v51 = vadd.f32 %v479_v45, %v478_v41  ;;  %v803_v52 = vadd.f32 %v2081_v25, %v795_v47  ;;  %v644_v53 = vmul.f32 %v2085_v40, %v638_v46 }
  0xdf   : > { %v887_v54 = vpop.f32.mrf.mxu0  ;;  %v960_v55 = vpop.f32.mrf.mxu1 }
  0xe0   : > { %v804_v57 = vmax.f32 %v803_v52, 0.0  ;;  %v645_v58 = vrot.slane %v644_v53, 4  ;;  %v961_v59 = vadd.f32 %v960_v55, %v887_v54  ;;  %v481_v61 = vrot.slane %v480_v51, 2 }
  0xe1   : > { %v1794_v60 = vpop.f32.mrf.mxu0  ;;  %v1799_v62 = vpop.f32.mrf.mxu1 }
  0xe2   : > { %v646_v63 = vadd.f32 %v645_v58, %v644_v53  ;;  %v969_v0 = vadd.f32 %v2088_v50, %v961_v59  ;;  %v810_v1 = vmul.f32 %v2092_v56, %v804_v57  ;;  %v482_v10 = vadd.f32 %v481_v61, %v480_v51  ;;  %v987_v62 = vpop.permute.xlu0 %986 }
  0xe3   : > { %v1073_v2 = vpop.f32.mrf.mxu0  ;;  %v1146_v3 = vpop.f32.mrf.mxu1  ;;  %v991_v59 = vsub.s32 0, %v990_v43 }
  0xe4   : > { %v647_v5 = vrot.slane %v646_v63, 2  ;;  %v970_v7 = vmax.f32 %v969_v0, 0.0  ;;  %v811_v8 = vrot.slane %v810_v1, 4  ;;  %v1147_v11 = vadd.f32 %v1146_v3, %v1073_v2 }
  0xe5   : > { %v1804_v9 = vpop.f32.mrf.mxu0  ;;  %v1809_v12 = vpop.f32.mrf.mxu1  ;;  %v483_v29 = vrot.slane %v482_v10, 1 }
  0xe6   : > { %v648_v13 = vadd.f32 %v647_v5, %v646_v63  ;;  %v812_v14 = vadd.f32 %v811_v8, %v810_v1  ;;  %v976_v16 = vmul.f32 %v2096_v4, %v970_v7  ;;  %v1150_v18 = vadd.f32 %v1147_v11, %v469_v24 }
  0xe7   : > { %v1226_v17 = vpop.f32.mrf.mxu0  ;;  %v1296_v19 = vpop.f32.mrf.mxu1  ;;  %v484_v45 = vadd.f32 %v483_v29, %v482_v10 }
  0xe8   : > { %v649_v21 = vrot.slane %v648_v13, 1  ;;  %v813_v22 = vrot.slane %v812_v14, 2  ;;  %v977_v23 = vrot.slane %v976_v16, 4  ;;  %v1297_v26 = vadd.f32 %v1296_v19, %v1226_v17 }
  0xe9   : > { %v1814_v27 = vpop.f32.mrf.mxu0  ;;  %v1151_v30 = vmax.f32 %v1150_v18, 0.0  ;;  %v1819_v31 = vpop.f32.mrf.mxu1 }
  0xea   : > { %v814_v32 = vadd.f32 %v813_v22, %v812_v14  ;;  %v978_v33 = vadd.f32 %v977_v23, %v976_v16  ;;  %v1300_v34 = vadd.f32 %v1297_v26, %v2083_v28  ;;  %v650_v37 = vadd.f32 %v649_v21, %v648_v13 }
  0xeb   : > { %v1376_v36 = vpop.f32.mrf.mxu0  ;;  %v1152_v38 = vmul.f32 %v1151_v30, %v476_v35  ;;  %v1446_v39 = vpop.f32.mrf.mxu1 }
  0xec   : > { %v815_v41 = vrot.slane %v814_v32, 1  ;;  %v979_v24 = vrot.slane %v978_v33, 2  ;;  %v1301_v42 = vmax.f32 %v1300_v34, 0.0  ;;  %v1447_v47 = vadd.f32 %v1446_v39, %v1376_v36 }
  0xed   : > { %v1824_v44 = vpop.f32.mrf.mxu0  ;;  %v1153_v46 = vrot.slane %v1152_v38, 4  ;;  %v1829_v48 = vpop.f32.mrf.mxu1  ;;  %v651_v28 = vadd.f32 %v650_v37, %v484_v45 }
  0xee   : > { %v816_v49 = vadd.f32 %v815_v41, %v814_v32  ;;  %v980_v51 = vadd.f32 %v979_v24, %v978_v33  ;;  %v1302_v52 = vmul.f32 %v1301_v42, %v2085_v40  ;;  %v1450_v55 = vadd.f32 %v1447_v47, %v2081_v25 }
  0xef   : > { %v1526_v53 = vpop.f32.mrf.mxu0  ;;  %v1154_v54 = vadd.f32 %v1153_v46, %v1152_v38  ;;  %v1596_v35 = vpop.f32.mrf.mxu1  ;;  %v992_v25 = vrot.slane %v987_v62, %v991_v59 }
  0xf0   : > { %v981_v57 = vrot.slane %v980_v51, 1  ;;  %v1303_v58 = vrot.slane %v1302_v52, 4  ;;  %v1597_v60 = vadd.f32 %v1596_v35, %v1526_v53  ;;  %v817_v63 = vadd.f32 %v816_v49, %v651_v28 }
  0xf1   : > { %v1834_v61 = vpop.f32.mrf.mxu0  ;;  %v1451_v0 = vmax.f32 %v1450_v55, 0.0  ;;  %v1839_v1 = vpop.f32.mrf.mxu1  ;;  %v1155_v2 = vrot.slane %v1154_v54, 2 }
  0xf2   : > { %v1304_v3 = vadd.f32 %v1303_v58, %v1302_v52  ;;  %v982_v5 = vadd.f32 %v981_v57, %v980_v51  ;;  %v1600_v40 = vadd.f32 %v1597_v60, %v2088_v50 }
  0xf3   : > { %v1452_v7 = vmul.f32 %v1451_v0, %v2092_v56  ;;  %v1156_v12 = vadd.f32 %v1155_v2, %v1154_v54 }
  0xf4   : > { %v1305_v8 = vrot.slane %v1304_v3, 2  ;;  %v983_v9 = vadd.f32 %v982_v5, %v817_v63  ;;  %v1601_v10 = vmax.f32 %v1600_v40, 0.0 }
  0xf5   : > { %v1453_v11 = vrot.slane %v1452_v7, 4  ;;  %v1157_v22 = vrot.slane %v1156_v12, 1 }
  0xf6   : > { %v1306_v13 = vadd.f32 %v1305_v8, %v1304_v3  ;;  %v993_v14 = vadd.f32 %v992_v25, %v983_v9  ;;  %v1602_v16 = vmul.f32 %v1601_v10, %v2096_v4 }
  0xf7   : > { %v1454_v17 = vadd.f32 %v1453_v11, %v1452_v7  ;;  %v1158_v29 = vadd.f32 %v1157_v22, %v1156_v12 }
  0xf8   : > { %v1307_v18 = vrot.slane %v1306_v13, 1  ;;  %v1708_v19 = vmul.f32 -1.442695, %v993_v14  ;;  %v1603_v20 = vrot.slane %v1602_v16, 4 }
  0xf9   : > { %v1455_v21 = vrot.slane %v1454_v17, 2 }
  0xfa   : > { %1853 = vpow2.f32 %v1708_v19  ;;  %v1604_v50 = vadd.f32 %v1603_v20, %v1602_v16  ;;  %v1308_v56 = vadd.f32 %v1307_v18, %v1306_v13 }
  0xfb   : > { %v1456_v23 = vadd.f32 %v1455_v21, %v1454_v17 }
  0xfc   : > { %v1605_v26 = vrot.slane %v1604_v50, 2  ;;  %v1309_v32 = vadd.f32 %v1308_v56, %v1158_v29 }
  0xfd   : > { %v1457_v27 = vrot.slane %v1456_v23, 1 }
  0xfe   : > { %v1606_v30 = vadd.f32 %v1605_v26, %v1604_v50 }
  0xff   : > { %v1458_v31 = vadd.f32 %v1457_v27, %v1456_v23 }
 0x100   : > { %v1607_v33 = vrot.slane %v1606_v30, 1 }
 0x101   : > { %v1459_v34 = vadd.f32 %v1458_v31, %v1309_v32 }
 0x102   : > { %v1608_v4 = vadd.f32 %v1607_v33, %v1606_v30 }
 0x104   : > { %v1609_v36 = vadd.f32 %v1608_v4, %v1459_v34 }
 0x106   : > { %v1610_v37 = vadd.f32 %v1609_v36, %v992_v25 }
 0x107   : > { %v1854_v38 = vpop.eup %1853 }
 0x108   : > { %v997_v39 = vadd.f32 1.0, %v1854_v38  ;;  %v1725_v41 = vmul.f32 -1.442695, %v1610_v37 }
 0x10a   : > { %1855 = vrcp.f32 %v997_v39 }
 0x10b   : > { %1857 = vpow2.f32 %v1725_v41 }
 0x117   : > { %v1856_v24 = vpop.eup %1855 }
 0x118   : > { %v1858_v42 = vpop.eup %1857  ;;  %v1000_v43 = vmul.f32 %v1856_v24, %v1947_v6 }
 0x119   : > { %v1614_v44 = vadd.f32 1.0, %v1858_v42 }
 0x11a   : > { %1001 = vst [vmem:[%s292_s23] sm:$0xf] %v1000_v43 }
 0x11b   : > { %1859 = vrcp.f32 %v1614_v44 }
 0x128   : > { %v1860_v45 = vpop.eup %1859 }
 0x129   : > { %v1617_v46 = vmul.f32 %v1860_v45, %v2012_v15 }
 0x12b   : > { %1618 = vst [vmem:[%s292_s23 + $0x4] sm:$0xf] %v1617_v46 }
 0x12c PF: > { %s19_s26 = sadd.s32 1, %s1867_s26  }
 0x12d   : > { %p16_p4 = scmp.ge.s32.totalorder %s19_s26, 4  }
 0x12f   :  { %18 = sbr.rel (!%p16_p4) target bundleno = 3 (0x3), region = 81 }

</bundles_post_ra>
